<compile_context>
chip_gen: v7x
topology: tpu7x:2x2x1
jax: 0.10.0
libtpu: 0.0.40
codegen_flags: <defaults>
</compile_context>

<pallas_src>
import jax
import jax.numpy as jnp
from jax.experimental import pallas as pl
from jax.experimental.pallas import tpu as pltpu


def _round_up(n, m):
    return ((n + m - 1) // m) * m


def _mlp_sigmoid_kernel(x_ref, w1_ref, b1_ref, w2_ref, b2_ref, w3_ref, b3_ref,
                        o_ref):
    # Layer 1: Linear(F, 512) + ReLU      (bf16 x bf16 -> f32 accumulate on the MXU)
    h1 = jnp.dot(x_ref[...], w1_ref[...], preferred_element_type=jnp.float32)
    h1 = jnp.maximum(h1 + b1_ref[...], 0.0)

    # Layer 2: Linear(512, 128) + ReLU
    h2 = jnp.dot(h1.astype(jnp.bfloat16), w2_ref[...],
                 preferred_element_type=jnp.float32)
    h2 = jnp.maximum(h2 + b2_ref[...], 0.0)

    # Layer 3: Linear(128, OUT_PAD) + sigmoid  (lane-dense 128-wide bf16 store)
    logits = jnp.dot(h2.astype(jnp.bfloat16), w3_ref[...],
                     preferred_element_type=jnp.float32)
    logits = logits + b3_ref[...]
    o_ref[...] = jax.nn.sigmoid(logits).astype(o_ref.dtype)


def prepare_params(params):
    """One-time parameter prep (hoisted out of the per-call path).

    Casts weights to bf16 and pads the last layer's output columns to a multiple
    of 128 so the kernel's stores are lane-dense/unmasked. Biases stay f32.
    """
    w1, b1 = params["w1"], params["b1"]
    w2, b2 = params["w2"], params["b2"]
    w3, b3 = params["w3"], params["b3"]
    out_dim = w3.shape[1]
    out_pad = _round_up(max(out_dim, 128), 128)

    w3_p = jnp.zeros((w3.shape[0], out_pad), jnp.float32).at[:, :out_dim].set(w3)
    b3_p = jnp.zeros((1, out_pad), jnp.float32).at[:, :out_dim].set(
        b3.reshape(1, -1))

    return {
        "w1": w1.astype(jnp.bfloat16),
        "b1": b1.reshape(1, -1).astype(jnp.float32),
        "w2": w2.astype(jnp.bfloat16),
        "b2": b2.reshape(1, -1).astype(jnp.float32),
        "w3": w3_p.astype(jnp.bfloat16),
        "b3": b3_p,
        "out_dim": out_dim,
    }


def feature_classifier_forward(x, prepared):
    """x: (B, ...) float array (flattened internally); prepared: output of prepare_params()."""
    x = x.reshape(x.shape[0], -1)          # mirrors x.view(x.size(0), -1)
    B, F = x.shape

    w1, b1 = prepared["w1"], prepared["b1"]
    w2, b2 = prepared["w2"], prepared["b2"]
    w3, b3 = prepared["w3"], prepared["b3"]
    out_dim = prepared["out_dim"]
    OUT_PAD = w3.shape[1]
    H1, H2 = w1.shape[1], w2.shape[1]

    # Batch tile: bf16 packs 16 rows per vreg, so round small batches to 16; cap at 256
    # (fills v6e/v7x 2x256^2 MXUs, multiple of v5e's 128) which also guarantees >=2 grid
    # steps for large B so v7x's second TensorCore isn't idle.
    if B <= 256:
        TM = _round_up(max(B, 16), 16)
    else:
        TM = 256
    Bp = _round_up(B, TM)

    # Single fused bf16 cast; pad rows only when actually needed (no f32 scratch copy).
    x_b = x.astype(jnp.bfloat16)
    if Bp != B:
        x_b = jnp.pad(x_b, ((0, Bp - B), (0, 0)))

    flops = 2 * Bp * (F * H1 + H1 * H2 + H2 * OUT_PAD)
    bytes_accessed = (Bp * F * 2                                   # x (bf16)
                      + (F * H1 + H1 * H2 + H2 * OUT_PAD) * 2      # weights (bf16)
                      + (H1 + H2 + OUT_PAD) * 4                    # biases (f32)
                      + Bp * OUT_PAD * 2)                          # output (bf16)

    # Actual VMEM working set: double-buffered x/out tiles + single-buffered resident params.
    vmem_bytes = (2 * TM * F * 2 + 2 * TM * OUT_PAD * 2
                  + (F * H1 + H1 * H2 + H2 * OUT_PAD) * 2
                  + (H1 + H2 + OUT_PAD) * 4)
    vmem_limit = int(min(max(32 << 20, 2 * vmem_bytes + (1 << 20)), 48 << 20))

    # Resident weights/biases: constant index_map + single buffering (block never changes,
    # so 2-deep pipelining would just double their VMEM footprint).
    resident = lambda a: pl.BlockSpec(a.shape, lambda i: (0, 0),
                                      pipeline_mode=pl.Buffered(1))

    out = pl.pallas_call(
        _mlp_sigmoid_kernel,
        out_shape=jax.ShapeDtypeStruct((Bp, OUT_PAD), jnp.bfloat16),
        grid=(Bp // TM,),
        in_specs=[
            pl.BlockSpec((TM, F), lambda i: (i, 0)),   # x: tiled over batch
            resident(w1), resident(b1),
            resident(w2), resident(b2),
            resident(w3), resident(b3),
        ],
        out_specs=pl.BlockSpec((TM, OUT_PAD), lambda i: (i, 0)),
        compiler_params=pltpu.CompilerParams(
            dimension_semantics=("parallel",),   # v7x: shard batch tiles across the 2 TCs
            vmem_limit_bytes=vmem_limit),
        cost_estimate=pl.CostEstimate(
            flops=flops,
            transcendentals=Bp * OUT_PAD,
            bytes_accessed=bytes_accessed),
    )(x_b, w1, b1, w2, b2, w3, b3)

    # Slice away batch/column padding; keep bf16 (sigmoid probabilities).
    return out[:B, :out_dim]


def init_params(key, input_dim, output_dim):
    """Deterministic synthetic init (shapes mirror the nn.Linear layers, stored as weight.T)."""
    k1, k2, k3, k4, k5, k6 = jax.random.split(key, 6)
    scale = 0.05
    return {
        "w1": scale * jax.random.normal(k1, (input_dim, 512), jnp.float32),
        "b1": scale * jax.random.normal(k2, (1, 512), jnp.float32),
        "w2": scale * jax.random.normal(k3, (512, 128), jnp.float32),
        "b2": scale * jax.random.normal(k4, (1, 128), jnp.float32),
        "w3": scale * jax.random.normal(k5, (128, output_dim), jnp.float32),
        "b3": scale * jax.random.normal(k6, (1, output_dim), jnp.float32),
    }


if __name__ == "__main__":
    selected_attrs = ["Attractive", "Eyeglasses", "Male", "Smiling"]  # 4 attrs
    input_dim = 512
    output_dim = len(selected_attrs)
    batch = 2

    key = jax.random.PRNGKey(0)
    kx, kp = jax.random.split(key)

    # Feature input; the module does x.view(B, -1), so feed (B, input_dim).
    x = jax.random.normal(kx, (batch, input_dim), jnp.float32)

    params = init_params(kp, input_dim, output_dim)
    prepared = prepare_params(params)   # one-time bf16 cast / padding (hoisted out of forward)

    out = feature_classifier_forward(x, prepared)
    out = jax.block_until_ready(out)

    # Pure-JAX f32 reference (eval-mode dropout = identity); tolerance covers the deliberate
    # bf16 weight/activation-output precision choice.
    xf = x.reshape(batch, -1)
    h1 = jnp.maximum(xf @ params["w1"] + params["b1"], 0.0)
    h2 = jnp.maximum(h1 @ params["w2"] + params["b2"], 0.0)
    ref = jax.nn.sigmoid(h2 @ params["w3"] + params["b3"])

    assert out.shape == (batch, output_dim)
    assert jnp.allclose(out.astype(jnp.float32), ref, atol=3e-2), "mismatch vs reference"

    print("KERNEL_OK")
</pallas_src>

<mosaic_0001>
module attributes {stable_mosaic.version = 11 : i64} {
  func.func @_mlp_sigmoid_kernel(%arg0: i32, %arg1: memref<16x512xbf16, #tpu.memory_space<vmem>>, %arg2: memref<512x512xbf16, #tpu.memory_space<vmem>>, %arg3: memref<1x512xf32, #tpu.memory_space<vmem>>, %arg4: memref<512x128xbf16, #tpu.memory_space<vmem>>, %arg5: memref<1x128xf32, #tpu.memory_space<vmem>>, %arg6: memref<128x128xbf16, #tpu.memory_space<vmem>>, %arg7: memref<1x128xf32, #tpu.memory_space<vmem>>, %arg8: memref<16x128xbf16, #tpu.memory_space<vmem>>) attributes {dimension_semantics = [#tpu.dimension_semantics<parallel>], iteration_bounds = array<i64: 1>, scalar_prefetch = 0 : i64, scratch_operands = 0 : i64, tpu.core_type = #tpu.core_type<tc>, window_params = [{transform_indices = @transform_0, window_bounds = array<i64: 16, 512>}, {pipeline_mode = #tpu.pipeline_mode<synchronous>, transform_indices = @transform_1, window_bounds = array<i64: 512, 512>}, {pipeline_mode = #tpu.pipeline_mode<synchronous>, transform_indices = @transform_2, window_bounds = array<i64: 1, 512>}, {pipeline_mode = #tpu.pipeline_mode<synchronous>, transform_indices = @transform_3, window_bounds = array<i64: 512, 128>}, {pipeline_mode = #tpu.pipeline_mode<synchronous>, transform_indices = @transform_4, window_bounds = array<i64: 1, 128>}, {pipeline_mode = #tpu.pipeline_mode<synchronous>, transform_indices = @transform_5, window_bounds = array<i64: 128, 128>}, {pipeline_mode = #tpu.pipeline_mode<synchronous>, transform_indices = @transform_6, window_bounds = array<i64: 1, 128>}, {transform_indices = @transform_7, window_bounds = array<i64: 16, 128>}]} {
    %c0 = arith.constant 0 : index
    %c0_0 = arith.constant 0 : index
    %0 = vector.load %arg1[%c0, %c0_0] : memref<16x512xbf16, #tpu.memory_space<vmem>>, vector<16x512xbf16>
    %c0_1 = arith.constant 0 : index
    %c0_2 = arith.constant 0 : index
    %1 = vector.load %arg2[%c0_1, %c0_2] : memref<512x512xbf16, #tpu.memory_space<vmem>>, vector<512x512xbf16>
    %cst = arith.constant dense<0.000000e+00> : vector<16x512xf32>
    %2 = tpu.matmul %0, %1, %cst {dimension_numbers = #tpu.dot_dimension_numbers<[1], [0], [0], [1], [0, 0, 1, 1], [], []>} : vector<16x512xbf16>, vector<512x512xbf16>, vector<16x512xf32> -> vector<16x512xf32>
    %c0_3 = arith.constant 0 : index
    %c0_4 = arith.constant 0 : index
    %3 = vector.load %arg3[%c0_3, %c0_4] : memref<1x512xf32, #tpu.memory_space<vmem>>, vector<1x512xf32>
    %4 = vector.broadcast %3 : vector<1x512xf32> to vector<16x512xf32>
    %5 = arith.addf %2, %4 : vector<16x512xf32>
    %cst_5 = arith.constant 0.000000e+00 : f32
    %6 = vector.broadcast %cst_5 : f32 to vector<16x512xf32>
    %7 = arith.maximumf %5, %6 : vector<16x512xf32>
    %8 = arith.truncf %7 : vector<16x512xf32> to vector<16x512xbf16>
    %c0_6 = arith.constant 0 : index
    %c0_7 = arith.constant 0 : index
    %9 = vector.load %arg4[%c0_6, %c0_7] : memref<512x128xbf16, #tpu.memory_space<vmem>>, vector<512x128xbf16>
    %cst_8 = arith.constant dense<0.000000e+00> : vector<16x128xf32>
    %10 = tpu.matmul %8, %9, %cst_8 {dimension_numbers = #tpu.dot_dimension_numbers<[1], [0], [0], [1], [0, 0, 1, 1], [], []>} : vector<16x512xbf16>, vector<512x128xbf16>, vector<16x128xf32> -> vector<16x128xf32>
    %c0_9 = arith.constant 0 : index
    %c0_10 = arith.constant 0 : index
    %11 = vector.load %arg5[%c0_9, %c0_10] : memref<1x128xf32, #tpu.memory_space<vmem>>, vector<1x128xf32>
    %12 = vector.broadcast %11 : vector<1x128xf32> to vector<16x128xf32>
    %13 = arith.addf %10, %12 : vector<16x128xf32>
    %cst_11 = arith.constant 0.000000e+00 : f32
    %14 = vector.broadcast %cst_11 : f32 to vector<16x128xf32>
    %15 = arith.maximumf %13, %14 : vector<16x128xf32>
    %16 = arith.truncf %15 : vector<16x128xf32> to vector<16x128xbf16>
    %c0_12 = arith.constant 0 : index
    %c0_13 = arith.constant 0 : index
    %17 = vector.load %arg6[%c0_12, %c0_13] : memref<128x128xbf16, #tpu.memory_space<vmem>>, vector<128x128xbf16>
    %cst_14 = arith.constant dense<0.000000e+00> : vector<16x128xf32>
    %18 = tpu.matmul %16, %17, %cst_14 {dimension_numbers = #tpu.dot_dimension_numbers<[1], [0], [0], [1], [0, 0, 1, 1], [], []>} : vector<16x128xbf16>, vector<128x128xbf16>, vector<16x128xf32> -> vector<16x128xf32>
    %c0_15 = arith.constant 0 : index
    %c0_16 = arith.constant 0 : index
    %19 = vector.load %arg7[%c0_15, %c0_16] : memref<1x128xf32, #tpu.memory_space<vmem>>, vector<1x128xf32>
    %20 = vector.broadcast %19 : vector<1x128xf32> to vector<16x128xf32>
    %21 = arith.addf %18, %20 : vector<16x128xf32>
    %22 = arith.negf %21 : vector<16x128xf32>
    %23 = math.exp %22 : vector<16x128xf32>
    %cst_17 = arith.constant 1.000000e+00 : f32
    %24 = vector.broadcast %cst_17 : f32 to vector<16x128xf32>
    %25 = arith.addf %24, %23 : vector<16x128xf32>
    %26 = arith.divf %24, %25 : vector<16x128xf32>
    %27 = arith.truncf %26 : vector<16x128xf32> to vector<16x128xbf16>
    %c0_18 = arith.constant 0 : index
    %c0_19 = arith.constant 0 : index
    %28 = vector.load %arg8[%c0_18, %c0_19] : memref<16x128xbf16, #tpu.memory_space<vmem>>, vector<16x128xbf16>
    tpu.vector_store %arg8[%c0_18, %c0_19], %27 {strides = array<i32>} : memref<16x128xbf16, #tpu.memory_space<vmem>>, vector<16x128xbf16>,
    return
  }
  func.func @transform_0(%arg0: i32) -> (i32, i32) {
    %c0_i32 = arith.constant 0 : i32
    %c0_i32_0 = arith.constant 0 : i32
    return %arg0, %c0_i32 : i32, i32
  }
  func.func @transform_1(%arg0: i32) -> (i32, i32) {
    %c0_i32 = arith.constant 0 : i32
    %c0_i32_0 = arith.constant 0 : i32
    %c0_i32_1 = arith.constant 0 : i32
    return %c0_i32, %c0_i32_0 : i32, i32
  }
  func.func @transform_2(%arg0: i32) -> (i32, i32) {
    %c0_i32 = arith.constant 0 : i32
    %c0_i32_0 = arith.constant 0 : i32
    %c0_i32_1 = arith.constant 0 : i32
    return %c0_i32, %c0_i32_0 : i32, i32
  }
  func.func @transform_3(%arg0: i32) -> (i32, i32) {
    %c0_i32 = arith.constant 0 : i32
    %c0_i32_0 = arith.constant 0 : i32
    %c0_i32_1 = arith.constant 0 : i32
    return %c0_i32, %c0_i32_0 : i32, i32
  }
  func.func @transform_4(%arg0: i32) -> (i32, i32) {
    %c0_i32 = arith.constant 0 : i32
    %c0_i32_0 = arith.constant 0 : i32
    %c0_i32_1 = arith.constant 0 : i32
    return %c0_i32, %c0_i32_0 : i32, i32
  }
  func.func @transform_5(%arg0: i32) -> (i32, i32) {
    %c0_i32 = arith.constant 0 : i32
    %c0_i32_0 = arith.constant 0 : i32
    %c0_i32_1 = arith.constant 0 : i32
    return %c0_i32, %c0_i32_0 : i32, i32
  }
  func.func @transform_6(%arg0: i32) -> (i32, i32) {
    %c0_i32 = arith.constant 0 : i32
    %c0_i32_0 = arith.constant 0 : i32
    %c0_i32_1 = arith.constant 0 : i32
    return %c0_i32, %c0_i32_0 : i32, i32
  }
  func.func @transform_7(%arg0: i32) -> (i32, i32) {
    %c0_i32 = arith.constant 0 : i32
    %c0_i32_0 = arith.constant 0 : i32
    return %arg0, %c0_i32 : i32, i32
  }
}

</mosaic_0001>

<bundles_post_ra>
// kernel: tpu_custom_call.1
= control target key start
LH: loop header
LB: loop body
LE: loop exit
PB: predicated region body
PF: predicated region fallthrough
CT: control target
= control target key end

     0   :  { %12 = vsyncpa [#allocation3], 0  ;;  %s2376_s0 = inlined_call_operand.hbm [shape: bf16[16,512], index: 0, kind: input, shape index: {}]   ;;  %s2377_s1 = inlined_call_operand.hbm [shape: bf16[512,512], index: 1, kind: input, shape index: {}]   ;;  %s2378_s2 = inlined_call_operand.vmem [shape: f32[1,512], index: 2, kind: input, shape index: {}]   ;;  %s2379_s3 = inlined_call_operand.hbm [shape: bf16[512,128], index: 3, kind: input, shape index: {}]   ;;  %s2380_s4 = inlined_call_operand.vmem [shape: f32[1,128], index: 4, kind: input, shape index: {}]   ;;  %s2381_s5 = inlined_call_operand.hbm [shape: bf16[128,128], index: 5, kind: input, shape index: {}]   ;;  %s2382_s6 = inlined_call_operand.vmem [shape: f32[1,128], index: 6, kind: input, shape index: {}]   ;;  %s2383_s7 = inlined_call_operand.hbm [shape: bf16[16,128], index: 7, kind: output, shape index: {}]  }
   0x1   :  { %13 = vsyncpa [#allocation6], 0 }
   0x2   :  { %14 = vsyncpa [#allocation9], 0 }
   0x3   :  { %15 = vsyncpa [#allocation4], 0  ;;  %s2231_s24 = smov [#allocation5]   ;;  %s2232_s26 = smov [#allocation2]  }
   0x4   :  { %s33_s25 = sshll.u32 %s2231_s24, 4  ;;  %s21_s27 = sshll.u32 %s2232_s26, 4  ;;  %s34_s25 = int_to_ptr.vmem [resolvable:$true] %s33_s25  ;;  %s2282_s27 = int_to_ptr.vmem [resolvable:$true] %s21_s27 }
   0x5   :  { %s2113_s30 = scalar_lea.hbm %s2377_s1, 16384 }
   0x6   :  { %p2114_p0 = scmp.ne.s32.totalorder %s2377_s1, %s2113_s30  ;;  %p2117_p1 = scmp.lt.u32.totalorder %s2113_s30, %s2377_s1 }
   0x8   :  { %p2119_p2 = pnand %p2117_p1, %p2114_p0 }
   0xa   :  { %2122 = shalt.err (!%p2119_p2)
}
   0xb   :  { %s2123_s12 = scalar_lea.vmem %s34_s25, 16384  ;;  %p2128_p4 = scmp.lt.s32.totalorder %s34_s25, %s34_s25 }
   0xc   :  { %p2124_p3 = scmp.ne.s32.totalorder %s34_s25, %s2123_s12  ;;  %p2129_p5 = scmp.lt.s32.totalorder %s2123_s12, %s2123_s12 }
   0xe   :  { %p2130_p6 = por %p2129_p5, %p2128_p4 }
  0x10   :  { %p2131_p7 = pnand %p2130_p6, %p2124_p3 }
  0x12   :  { %2134 = shalt.err (!%p2131_p7)
}
  0x13   :  { %s2233_s13 = smov 256   ;;  %s2234_s14 = smov 16  }
  0x14   :  { %39 = dma.hbm_to_vmem [thread:$0]  %s2377_s1, 16384, %s34_s25, [#allocation6], %s2233_s13, %s2233_s13, %s2234_s14  }
  0x15   :  { %s2135_s19 = scalar_lea.hbm %s2376_s0, 512 }
  0x16   :  { %p2136_p8 = scmp.ne.s32.totalorder %s2376_s0, %s2135_s19  ;;  %p2139_p9 = scmp.lt.u32.totalorder %s2135_s19, %s2376_s0 }
  0x18   :  { %p2141_p10 = pnand %p2139_p9, %p2136_p8 }
  0x1a   :  { %2144 = shalt.err (!%p2141_p10)
}
  0x1b   :  { %s2145_s24 = scalar_lea.vmem %s2282_s27, 512  ;;  %p2150_p12 = scmp.lt.s32.totalorder %s2282_s27, %s2282_s27 }
  0x1c   :  { %p2146_p11 = scmp.ne.s32.totalorder %s2282_s27, %s2145_s24  ;;  %p2151_p13 = scmp.lt.s32.totalorder %s2145_s24, %s2145_s24 }
  0x1e   :  { %p2152_p0 = por %p2151_p13, %p2150_p12 }
  0x20   :  { %p2153_p1 = pnand %p2152_p0, %p2146_p11 }
  0x22   :  { %2156 = shalt.err (!%p2153_p1)
}
  0x23   :  { %27 = dma.hbm_to_vmem [thread:$0]  %s2376_s0, 512, %s2282_s27, [#allocation3], %s2233_s13, %s2233_s13, %s2234_s14  }
  0x24   :  { %s2235_s26 = smov [#allocation7]   ;;  %s2157_s8 = scalar_lea.hbm %s2379_s3, 4096 }
  0x25   :  { %s47_s28 = sshll.u32 %s2235_s26, 4  ;;  %p2158_p2 = scmp.ne.s32.totalorder %s2379_s3, %s2157_s8  ;;  %s48_s28 = int_to_ptr.vmem [resolvable:$true] %s47_s28 }
  0x26   :  { %p2161_p3 = scmp.lt.u32.totalorder %s2157_s8, %s2379_s3 }
  0x28   :  { %p2163_p4 = pnand %p2161_p3, %p2158_p2 }
  0x2a   :  { %2166 = shalt.err (!%p2163_p4)
}
  0x2b   :  { %s2167_s15 = scalar_lea.vmem %s48_s28, 4096  ;;  %p2172_p6 = scmp.lt.s32.totalorder %s48_s28, %s48_s28 }
  0x2c   :  { %p2168_p5 = scmp.ne.s32.totalorder %s48_s28, %s2167_s15  ;;  %p2173_p7 = scmp.lt.s32.totalorder %s2167_s15, %s2167_s15 }
  0x2e   :  { %p2174_p8 = por %p2173_p7, %p2172_p6 }
  0x30   :  { %p2175_p9 = pnand %p2174_p8, %p2168_p5 }
  0x32   :  { %2178 = shalt.err (!%p2175_p9)
}
  0x33   :  { %s2236_s0 = smov 64   ;;  %s2237_s27 = smov 4  }
  0x34   :  { %53 = dma.hbm_to_vmem [thread:$0]  %s2379_s3, 4096, %s48_s28, [#allocation6], %s2236_s0, %s2236_s0, %s2237_s27  }
  0x35   :  { %s2238_s16 = smov [#allocation8]   ;;  %s2179_s20 = scalar_lea.hbm %s2381_s5, 1024 }
  0x36   :  { %s61_s17 = sshll.u32 %s2238_s16, 4  ;;  %p2180_p10 = scmp.ne.s32.totalorder %s2381_s5, %s2179_s20  ;;  %s62_s17 = int_to_ptr.vmem [resolvable:$true] %s61_s17 }
  0x37   :  { %p2183_p11 = scmp.lt.u32.totalorder %s2179_s20, %s2381_s5 }
  0x39   :  { %p2185_p12 = pnand %p2183_p11, %p2180_p10 }
  0x3b   :  { %2188 = shalt.err (!%p2185_p12)
}
  0x3c   :  { %s2189_s1 = scalar_lea.vmem %s62_s17, 1024  ;;  %p2194_p0 = scmp.lt.s32.totalorder %s62_s17, %s62_s17 }
  0x3d   :  { %p2190_p13 = scmp.ne.s32.totalorder %s62_s17, %s2189_s1  ;;  %p2195_p1 = scmp.lt.s32.totalorder %s2189_s1, %s2189_s1 }
  0x3f   :  { %p2196_p2 = por %p2195_p1, %p2194_p0 }
  0x41   :  { %p2197_p3 = pnand %p2196_p2, %p2190_p13 }
  0x43   :  { %2200 = shalt.err (!%p2197_p3)
}
  0x44   :  { %67 = dma.hbm_to_vmem [thread:$0]  %s2381_s5, 1024, %s62_s17, [#allocation9], %s2236_s0, %s2236_s0, %s2237_s27  }
  0x45   :  { %2223 = dma.done.wait [#allocation3], 512  }
  0x46   :  { %2224 = vsyncadd [#allocation3], 4294966784 }
  0x47   :  { %2225 = dma.done.wait [#allocation6], 20480  }
  0x48   :  { %2226 = vsyncadd [#allocation6], 4294946816 }
  0x49   :  { %2227 = dma.done.wait [#allocation9], 1024  }
  0x4a   :  { %2228 = vsyncadd [#allocation9], 4294966272  ;;  %v1867_v0 = vld [vmem:[#allocation5 + $0x4] ss:$16 sps:$4 sm:$0xff]   ;;  %v1869_v1 = vld [vmem:[#allocation5 + $0xc] ss:$16 sps:$4 sm:$0xff]  }
  0x4b   :  { %897 = vmatprep.subr.bf16.mxu0 %v1867_v0  ;;  %v1871_v2 = vld [vmem:[#allocation5] ss:$16 sps:$4 sm:$0xff]   ;;  %v1872_v3 = vld [vmem:[#allocation5 + $0x8] ss:$16 sps:$4 sm:$0xff]   ;;  %983 = vmatprep.subr.bf16.mxu1 %v1869_v1  ;;  %v1873_v4 = vld [vmem:[#allocation5 + $0x24] ss:$16 sps:$4 sm:$0xff]  }
  0x4c   :  { %898 = vmatpush1.bf16.msra.mxu0 %v1871_v2  ;;  %984 = vmatpush1.bf16.msra.mxu1 %v1872_v3  ;;  %v1875_v5 = vld [vmem:[#allocation5 + $0x2c] ss:$16 sps:$4 sm:$0xff]   ;;  %v1877_v6 = vld [vmem:[#allocation5 + $0x20] ss:$16 sps:$4 sm:$0xff]   ;;  %v1878_v7 = vld [vmem:[#allocation5 + $0x28] ss:$16 sps:$4 sm:$0xff]  }
  0x4d   :  { %899 = vmatprep.subr.bf16.mxu0 %v1873_v4  ;;  %985 = vmatprep.subr.bf16.mxu1 %v1875_v5  ;;  %v1879_v8 = vld [vmem:[#allocation5 + $0x44] ss:$16 sps:$4 sm:$0xff]   ;;  %v1881_v9 = vld [vmem:[#allocation5 + $0x4c] ss:$16 sps:$4 sm:$0xff]   ;;  %v1883_v10 = vld [vmem:[#allocation5 + $0x40] ss:$16 sps:$4 sm:$0xff]  }
  0x4e   :  { %v1884_v11 = vld [vmem:[#allocation5 + $0x48] ss:$16 sps:$4 sm:$0xff]   ;;  %v1885_v12 = vld [vmem:[#allocation5 + $0x64] ss:$16 sps:$4 sm:$0xff]   ;;  %v1887_v13 = vld [vmem:[#allocation5 + $0x6c] ss:$16 sps:$4 sm:$0xff]  }
  0x4f   :  { %v1889_v14 = vld [vmem:[#allocation5 + $0x60] ss:$16 sps:$4 sm:$0xff]   ;;  %v1890_v15 = vld [vmem:[#allocation5 + $0x68] ss:$16 sps:$4 sm:$0xff]   ;;  %v1891_v16 = vld [vmem:[#allocation5 + $0x84] ss:$16 sps:$4 sm:$0xff]  }
  0x50   :  { %900 = vmatpush1.bf16.msra.mxu0 %v1877_v6  ;;  %986 = vmatpush1.bf16.msra.mxu1 %v1878_v7  ;;  %v1893_v17 = vld [vmem:[#allocation5 + $0x8c] ss:$16 sps:$4 sm:$0xff]   ;;  %v1895_v18 = vld [vmem:[#allocation5 + $0x80] ss:$16 sps:$4 sm:$0xff]   ;;  %v1896_v19 = vld [vmem:[#allocation5 + $0x88] ss:$16 sps:$4 sm:$0xff]  }
  0x51   :  { %901 = vmatprep.subr.bf16.mxu0 %v1879_v8  ;;  %987 = vmatprep.subr.bf16.mxu1 %v1881_v9  ;;  %v1897_v20 = vld [vmem:[#allocation5 + $0xa4] ss:$16 sps:$4 sm:$0xff]   ;;  %v1899_v21 = vld [vmem:[#allocation5 + $0xac] ss:$16 sps:$4 sm:$0xff]   ;;  %v1901_v22 = vld [vmem:[#allocation5 + $0xa0] ss:$16 sps:$4 sm:$0xff]  }
  0x52   :  { %v1902_v23 = vld [vmem:[#allocation5 + $0xa8] ss:$16 sps:$4 sm:$0xff]   ;;  %v1903_v24 = vld [vmem:[#allocation5 + $0xc4] ss:$16 sps:$4 sm:$0xff]   ;;  %v1905_v25 = vld [vmem:[#allocation5 + $0xcc] ss:$16 sps:$4 sm:$0xff]  }
  0x53   :  { %v1907_v26 = vld [vmem:[#allocation5 + $0xc0] ss:$16 sps:$4 sm:$0xff]   ;;  %v1908_v27 = vld [vmem:[#allocation5 + $0xc8] ss:$16 sps:$4 sm:$0xff]   ;;  %v1909_v28 = vld [vmem:[#allocation5 + $0xe4] ss:$16 sps:$4 sm:$0xff]  }
  0x54   :  { %902 = vmatpush1.bf16.msra.mxu0 %v1883_v10  ;;  %988 = vmatpush1.bf16.msra.mxu1 %v1884_v11  ;;  %v1911_v29 = vld [vmem:[#allocation5 + $0xec] ss:$16 sps:$4 sm:$0xff]   ;;  %v1913_v30 = vld [vmem:[#allocation5 + $0xe0] ss:$16 sps:$4 sm:$0xff]   ;;  %v1914_v31 = vld [vmem:[#allocation5 + $0xe8] ss:$16 sps:$4 sm:$0xff]  }
  0x55   :  { %903 = vmatprep.subr.bf16.mxu0 %v1885_v12  ;;  %989 = vmatprep.subr.bf16.mxu1 %v1887_v13  ;;  %v1915_v32 = vld [vmem:[#allocation5 + $0x104] ss:$16 sps:$4 sm:$0xff]   ;;  %v1917_v33 = vld [vmem:[#allocation5 + $0x10c] ss:$16 sps:$4 sm:$0xff]   ;;  %v1919_v34 = vld [vmem:[#allocation5 + $0x100] ss:$16 sps:$4 sm:$0xff]  }
  0x56   :  { %v1920_v35 = vld [vmem:[#allocation5 + $0x108] ss:$16 sps:$4 sm:$0xff]   ;;  %v1921_v36 = vld [vmem:[#allocation5 + $0x124] ss:$16 sps:$4 sm:$0xff]   ;;  %v1923_v37 = vld [vmem:[#allocation5 + $0x12c] ss:$16 sps:$4 sm:$0xff]  }
  0x57   :  { %v1925_v38 = vld [vmem:[#allocation5 + $0x120] ss:$16 sps:$4 sm:$0xff]   ;;  %v1926_v39 = vld [vmem:[#allocation5 + $0x128] ss:$16 sps:$4 sm:$0xff]   ;;  %v1927_v40 = vld [vmem:[#allocation5 + $0x144] ss:$16 sps:$4 sm:$0xff]  }
  0x58   :  { %904 = vmatpush1.bf16.msra.mxu0 %v1889_v14  ;;  %990 = vmatpush1.bf16.msra.mxu1 %v1890_v15  ;;  %v1929_v41 = vld [vmem:[#allocation5 + $0x14c] ss:$16 sps:$4 sm:$0xff]   ;;  %v1931_v42 = vld [vmem:[#allocation5 + $0x140] ss:$16 sps:$4 sm:$0xff]   ;;  %v1932_v43 = vld [vmem:[#allocation5 + $0x148] ss:$16 sps:$4 sm:$0xff]  }
  0x59   :  { %905 = vmatprep.subr.bf16.mxu0 %v1891_v16  ;;  %991 = vmatprep.subr.bf16.mxu1 %v1893_v17  ;;  %v1933_v44 = vld [vmem:[#allocation5 + $0x164] ss:$16 sps:$4 sm:$0xff]   ;;  %v1935_v45 = vld [vmem:[#allocation5 + $0x16c] ss:$16 sps:$4 sm:$0xff]   ;;  %v1937_v46 = vld [vmem:[#allocation5 + $0x160] ss:$16 sps:$4 sm:$0xff]  }
  0x5a   :  { %v1938_v47 = vld [vmem:[#allocation5 + $0x168] ss:$16 sps:$4 sm:$0xff]   ;;  %v1965_v48 = vld [vmem:[#allocation2 + $0x4] ss:$16 sps:$4 sm:$0xff]   ;;  %v1941_v50 = vld [vmem:[#allocation5 + $0x18c] ss:$16 sps:$4 sm:$0xff]  }
  0x5b   :  { %v1939_v49 = vld [vmem:[#allocation5 + $0x184] ss:$16 sps:$4 sm:$0xff]   ;;  %929 = vmatprep.mubr.bf16.mxu0 %v1965_v48  ;;  %1015 = vmatprep.mubr.bf16.mxu1 %v1965_v48  ;;  %v1943_v51 = vld [vmem:[#allocation5 + $0x180] ss:$16 sps:$4 sm:$0xff]   ;;  %v1944_v52 = vld [vmem:[#allocation5 + $0x188] ss:$16 sps:$4 sm:$0xff]  }
  0x5c   :  { %906 = vmatpush1.bf16.msra.mxu0 %v1895_v18  ;;  %992 = vmatpush1.bf16.msra.mxu1 %v1896_v19  ;;  %v1945_v53 = vld [vmem:[#allocation5 + $0x1a4] ss:$16 sps:$4 sm:$0xff]   ;;  %v1947_v54 = vld [vmem:[#allocation5 + $0x1ac] ss:$16 sps:$4 sm:$0xff]   ;;  %v1949_v55 = vld [vmem:[#allocation5 + $0x1a0] ss:$16 sps:$4 sm:$0xff]  }
  0x5d   :  { %907 = vmatprep.subr.bf16.mxu0 %v1897_v20  ;;  %993 = vmatprep.subr.bf16.mxu1 %v1899_v21  ;;  %v1950_v56 = vld [vmem:[#allocation5 + $0x1a8] ss:$16 sps:$4 sm:$0xff]   ;;  %v1951_v57 = vld [vmem:[#allocation5 + $0x1c4] ss:$16 sps:$4 sm:$0xff]   ;;  %v1953_v58 = vld [vmem:[#allocation5 + $0x1cc] ss:$16 sps:$4 sm:$0xff]  }
  0x5e   :  { %v1955_v59 = vld [vmem:[#allocation5 + $0x1c0] ss:$16 sps:$4 sm:$0xff]   ;;  %v1956_v60 = vld [vmem:[#allocation5 + $0x1c8] ss:$16 sps:$4 sm:$0xff]   ;;  %v1957_v61 = vld [vmem:[#allocation5 + $0x1e4] ss:$16 sps:$4 sm:$0xff]  }
  0x5f   :  { %v1959_v62 = vld [vmem:[#allocation5 + $0x1ec] ss:$16 sps:$4 sm:$0xff]   ;;  %v1961_v63 = vld [vmem:[#allocation5 + $0x1e0] ss:$16 sps:$4 sm:$0xff]   ;;  %v1962_v0 = vld [vmem:[#allocation5 + $0x1e8] ss:$16 sps:$4 sm:$0xff]  }
  0x60   :  { %908 = vmatpush1.bf16.msra.mxu0 %v1901_v22  ;;  %994 = vmatpush1.bf16.msra.mxu1 %v1902_v23  ;;  %v1968_v1 = vld [vmem:[#allocation5 + $0x204] ss:$16 sps:$4 sm:$0xff]   ;;  %v1971_v2 = vld [vmem:[#allocation5 + $0x20c] ss:$16 sps:$4 sm:$0xff]   ;;  %v1963_v3 = vld [vmem:[#allocation2] ss:$16 sps:$4 sm:$0xff]  }
  0x61   :  { %909 = vmatprep.subr.bf16.mxu0 %v1903_v24  ;;  %995 = vmatprep.subr.bf16.mxu1 %v1905_v25  ;;  %v1966_v4 = vld [vmem:[#allocation5 + $0x200] ss:$16 sps:$4 sm:$0xff]   ;;  %v1969_v5 = vld [vmem:[#allocation5 + $0x208] ss:$16 sps:$4 sm:$0xff]   ;;  %v1974_v6 = vld [vmem:[#allocation5 + $0x224] ss:$16 sps:$4 sm:$0xff]  }
  0x62   :  { %v1977_v7 = vld [vmem:[#allocation5 + $0x22c] ss:$16 sps:$4 sm:$0xff]   ;;  %v1972_v8 = vld [vmem:[#allocation5 + $0x220] ss:$16 sps:$4 sm:$0xff]   ;;  %v1975_v9 = vld [vmem:[#allocation5 + $0x228] ss:$16 sps:$4 sm:$0xff]  }
  0x63   :  { %v1980_v10 = vld [vmem:[#allocation5 + $0x244] ss:$16 sps:$4 sm:$0xff]   ;;  %v1983_v11 = vld [vmem:[#allocation5 + $0x24c] ss:$16 sps:$4 sm:$0xff]   ;;  %v1978_v12 = vld [vmem:[#allocation5 + $0x240] ss:$16 sps:$4 sm:$0xff]  }
  0x64   :  { %910 = vmatpush1.bf16.msra.mxu0 %v1907_v26  ;;  %996 = vmatpush1.bf16.msra.mxu1 %v1908_v27  ;;  %v1981_v13 = vld [vmem:[#allocation5 + $0x248] ss:$16 sps:$4 sm:$0xff]   ;;  %v1986_v14 = vld [vmem:[#allocation5 + $0x264] ss:$16 sps:$4 sm:$0xff]   ;;  %v1989_v15 = vld [vmem:[#allocation5 + $0x26c] ss:$16 sps:$4 sm:$0xff]  }
  0x65   :  { %911 = vmatprep.subr.bf16.mxu0 %v1909_v28  ;;  %997 = vmatprep.subr.bf16.mxu1 %v1911_v29  ;;  %v1984_v16 = vld [vmem:[#allocation5 + $0x260] ss:$16 sps:$4 sm:$0xff]   ;;  %v1987_v17 = vld [vmem:[#allocation5 + $0x268] ss:$16 sps:$4 sm:$0xff]   ;;  %v1992_v18 = vld [vmem:[#allocation5 + $0x284] ss:$16 sps:$4 sm:$0xff]  }
  0x66   :  { %v1995_v19 = vld [vmem:[#allocation5 + $0x28c] ss:$16 sps:$4 sm:$0xff]   ;;  %v1990_v20 = vld [vmem:[#allocation5 + $0x280] ss:$16 sps:$4 sm:$0xff]   ;;  %v1993_v21 = vld [vmem:[#allocation5 + $0x288] ss:$16 sps:$4 sm:$0xff]  }
  0x67   :  { %v1998_v22 = vld [vmem:[#allocation5 + $0x2a4] ss:$16 sps:$4 sm:$0xff]   ;;  %v2001_v23 = vld [vmem:[#allocation5 + $0x2ac] ss:$16 sps:$4 sm:$0xff]   ;;  %v1996_v24 = vld [vmem:[#allocation5 + $0x2a0] ss:$16 sps:$4 sm:$0xff]  }
  0x68   :  { %912 = vmatpush1.bf16.msra.mxu0 %v1913_v30  ;;  %998 = vmatpush1.bf16.msra.mxu1 %v1914_v31  ;;  %v1999_v25 = vld [vmem:[#allocation5 + $0x2a8] ss:$16 sps:$4 sm:$0xff]   ;;  %v2004_v26 = vld [vmem:[#allocation5 + $0x2c4] ss:$16 sps:$4 sm:$0xff]   ;;  %v2007_v27 = vld [vmem:[#allocation5 + $0x2cc] ss:$16 sps:$4 sm:$0xff]  }
  0x69   :  { %913 = vmatprep.subr.bf16.mxu0 %v1915_v32  ;;  %999 = vmatprep.subr.bf16.mxu1 %v1917_v33  ;;  %v2002_v28 = vld [vmem:[#allocation5 + $0x2c0] ss:$16 sps:$4 sm:$0xff]   ;;  %v2005_v29 = vld [vmem:[#allocation5 + $0x2c8] ss:$16 sps:$4 sm:$0xff]   ;;  %v2064_v30 = vld [vmem:[#allocation2 + $0xc] ss:$16 sps:$4 sm:$0xff]  }
  0x6a   :  { %v2010_v31 = vld [vmem:[#allocation5 + $0x2e4] ss:$16 sps:$4 sm:$0xff]   ;;  %v2013_v32 = vld [vmem:[#allocation5 + $0x2ec] ss:$16 sps:$4 sm:$0xff]   ;;  %v2008_v33 = vld [vmem:[#allocation5 + $0x2e0] ss:$16 sps:$4 sm:$0xff]  }
  0x6b   :  { %v2037_v48 = vld [vmem:[#allocation5 + $0x36c] ss:$16 sps:$4 sm:$0xff]   ;;  %vm2240_vm0 = vmmov 0   ;;  %s2241_s30 = smov [#allocation10]  }
  0x6c   :  { %914 = vmatpush1.bf16.msra.mxu0 %v1919_v34  ;;  %1000 = vmatpush1.bf16.msra.mxu1 %v1920_v35  ;;  %v2011_v34 = vld [vmem:[#allocation5 + $0x2e8] ss:$16 sps:$4 sm:$0xff]   ;;  %v2016_v35 = vld [vmem:[#allocation5 + $0x304] ss:$16 sps:$4 sm:$0xff]   ;;  %s1568_s8 = sshll.u32 %s2241_s30, 4  ;;  %s1569_s8 = int_to_ptr.vmem [resolvable:$true] %s1568_s8 }
  0x6d   :  { %915 = vmatprep.subr.bf16.mxu0 %v1921_v36  ;;  %1001 = vmatprep.subr.bf16.mxu1 %v1923_v37  ;;  %v2019_v36 = vld [vmem:[#allocation5 + $0x30c] ss:$16 sps:$4 sm:$0xff]   ;;  %v2014_v37 = vld [vmem:[#allocation5 + $0x300] ss:$16 sps:$4 sm:$0xff]   ;;  %p2206_p5 = scmp.lt.s32.totalorder %s1569_s8, %s1569_s8 }
  0x70   :  { %916 = vmatpush1.bf16.msra.mxu0 %v1925_v38  ;;  %1002 = vmatpush1.bf16.msra.mxu1 %v1926_v39  ;;  %v2017_v38 = vld [vmem:[#allocation5 + $0x308] ss:$16 sps:$4 sm:$0xff]   ;;  %v2022_v39 = vld [vmem:[#allocation5 + $0x324] ss:$16 sps:$4 sm:$0xff]  }
  0x71   :  { %917 = vmatprep.subr.bf16.mxu0 %v1927_v40  ;;  %1003 = vmatprep.subr.bf16.mxu1 %v1929_v41  ;;  %v2025_v40 = vld [vmem:[#allocation5 + $0x32c] ss:$16 sps:$4 sm:$0xff]   ;;  %v2020_v41 = vld [vmem:[#allocation5 + $0x320] ss:$16 sps:$4 sm:$0xff]  }
  0x74   :  { %918 = vmatpush1.bf16.msra.mxu0 %v1931_v42  ;;  %1004 = vmatpush1.bf16.msra.mxu1 %v1932_v43  ;;  %v2023_v42 = vld [vmem:[#allocation5 + $0x328] ss:$16 sps:$4 sm:$0xff]   ;;  %v2028_v43 = vld [vmem:[#allocation5 + $0x344] ss:$16 sps:$4 sm:$0xff]  }
  0x75   :  { %919 = vmatprep.subr.bf16.mxu0 %v1933_v44  ;;  %1005 = vmatprep.subr.bf16.mxu1 %v1935_v45  ;;  %v2031_v44 = vld [vmem:[#allocation5 + $0x34c] ss:$16 sps:$4 sm:$0xff]   ;;  %v2026_v45 = vld [vmem:[#allocation5 + $0x340] ss:$16 sps:$4 sm:$0xff]  }
  0x78   :  { %920 = vmatpush1.bf16.msra.mxu0 %v1937_v46  ;;  %1006 = vmatpush1.bf16.msra.mxu1 %v1938_v47  ;;  %v2029_v46 = vld [vmem:[#allocation5 + $0x348] ss:$16 sps:$4 sm:$0xff]   ;;  %v2034_v47 = vld [vmem:[#allocation5 + $0x364] ss:$16 sps:$4 sm:$0xff]  }
  0x79   :  { %921 = vmatprep.subr.bf16.mxu0 %v1939_v49  ;;  %1007 = vmatprep.subr.bf16.mxu1 %v1941_v50  ;;  %v2032_v49 = vld [vmem:[#allocation5 + $0x360] ss:$16 sps:$4 sm:$0xff]   ;;  %v2035_v50 = vld [vmem:[#allocation5 + $0x368] ss:$16 sps:$4 sm:$0xff]  }
  0x7c   :  { %922 = vmatpush1.bf16.msra.mxu0 %v1943_v51  ;;  %1008 = vmatpush1.bf16.msra.mxu1 %v1944_v52  ;;  %v2040_v51 = vld [vmem:[#allocation5 + $0x384] ss:$16 sps:$4 sm:$0xff]   ;;  %v2043_v52 = vld [vmem:[#allocation5 + $0x38c] ss:$16 sps:$4 sm:$0xff]  }
  0x7d   :  { %923 = vmatprep.subr.bf16.mxu0 %v1945_v53  ;;  %1009 = vmatprep.subr.bf16.mxu1 %v1947_v54  ;;  %v2038_v53 = vld [vmem:[#allocation5 + $0x380] ss:$16 sps:$4 sm:$0xff]   ;;  %v2041_v54 = vld [vmem:[#allocation5 + $0x388] ss:$16 sps:$4 sm:$0xff]  }
  0x80   :  { %924 = vmatpush1.bf16.msra.mxu0 %v1949_v55  ;;  %1010 = vmatpush1.bf16.msra.mxu1 %v1950_v56  ;;  %v2046_v55 = vld [vmem:[#allocation5 + $0x3a4] ss:$16 sps:$4 sm:$0xff]   ;;  %v2049_v56 = vld [vmem:[#allocation5 + $0x3ac] ss:$16 sps:$4 sm:$0xff]  }
  0x81   :  { %925 = vmatprep.subr.bf16.mxu0 %v1951_v57  ;;  %1011 = vmatprep.subr.bf16.mxu1 %v1953_v58  ;;  %v2044_v57 = vld [vmem:[#allocation5 + $0x3a0] ss:$16 sps:$4 sm:$0xff]   ;;  %v2047_v58 = vld [vmem:[#allocation5 + $0x3a8] ss:$16 sps:$4 sm:$0xff]  }
  0x84   :  { %926 = vmatpush1.bf16.msra.mxu0 %v1955_v59  ;;  %1012 = vmatpush1.bf16.msra.mxu1 %v1956_v60  ;;  %v2052_v59 = vld [vmem:[#allocation5 + $0x3c4] ss:$16 sps:$4 sm:$0xff]   ;;  %v2055_v60 = vld [vmem:[#allocation5 + $0x3cc] ss:$16 sps:$4 sm:$0xff]  }
  0x85   :  { %927 = vmatprep.subr.bf16.mxu0 %v1957_v61  ;;  %1013 = vmatprep.subr.bf16.mxu1 %v1959_v62  ;;  %v2050_v61 = vld [vmem:[#allocation5 + $0x3c0] ss:$16 sps:$4 sm:$0xff]   ;;  %v2053_v62 = vld [vmem:[#allocation5 + $0x3c8] ss:$16 sps:$4 sm:$0xff]  }
  0x88   :  { %928 = vmatpush1.bf16.msra.mxu0 %v1961_v63  ;;  %1014 = vmatpush1.bf16.msra.mxu1 %v1962_v0  ;;  %v2058_v63 = vld [vmem:[#allocation5 + $0x3e4] ss:$16 sps:$4 sm:$0xff]   ;;  %v2061_v0 = vld [vmem:[#allocation5 + $0x3ec] ss:$16 sps:$4 sm:$0xff]  }
  0x89   :  { %940 = vmatprep.subr.bf16.mxu0 %v1968_v1  ;;  %1026 = vmatprep.subr.bf16.mxu1 %v1971_v2  ;;  %v2056_v1 = vld [vmem:[#allocation5 + $0x3e0] ss:$16 sps:$4 sm:$0xff]   ;;  %v2059_v2 = vld [vmem:[#allocation5 + $0x3e8] ss:$16 sps:$4 sm:$0xff]  }
  0x8b   :  { %930 = vmatmul.mubr.bf16.vlgmr.msra.gmra.mrb[0].mxu0 %v1963_v3  ;;  %1016 = vmatmul.mubr.bf16.vlgmr.msra.gmra.mrb[0].mxu1 %v1963_v3  ;;  %v2065_v3 = vld [vmem:[#allocation7 + $0x40] sm:$0xff]  }
  0x8c   :  { %941 = vmatpush1.bf16.msra.mxu0 %v1966_v4  ;;  %1027 = vmatpush1.bf16.msra.mxu1 %v1969_v5  ;;  %v2066_v4 = vld [vmem:[#allocation7 + $0xc0] sm:$0xff]   ;;  %v2062_v5 = vld [vmem:[#allocation2 + $0x8] ss:$16 sps:$4 sm:$0xff]  }
  0x8d   :  { %942 = vmatprep.subr.bf16.mxu0 %v1974_v6  ;;  %1028 = vmatprep.subr.bf16.mxu1 %v1977_v7  ;;  %v2067_v6 = vld [vmem:[#allocation7] sm:$0xff]  }
  0x8e   :  { %972 = vmatprep.mubr.bf16.mxu0 %v2064_v30  ;;  %1058 = vmatprep.mubr.bf16.mxu1 %v2064_v30  ;;  %v2068_v7 = vld [vmem:[#allocation7 + $0x80] sm:$0xff]   ;;  %v2091_v30 = vld [vmem:[#allocation7 + $0x30] sm:$0xff]  }
  0x90   :  { %943 = vmatpush1.bf16.msra.mxu0 %v1972_v8  ;;  %1029 = vmatpush1.bf16.msra.mxu1 %v1975_v9  ;;  %v2069_v8 = vld [vmem:[#allocation7 + $0x48] sm:$0xff]  }
  0x91   :  { %944 = vmatprep.subr.bf16.mxu0 %v1980_v10  ;;  %1030 = vmatprep.subr.bf16.mxu1 %v1983_v11  ;;  %v2070_v9 = vld [vmem:[#allocation7 + $0xc8] sm:$0xff]  }
  0x92   :  { %v2071_v10 = vld [vmem:[#allocation7 + $0x8] sm:$0xff]  }
  0x93   :  { %v2072_v11 = vld [vmem:[#allocation7 + $0x88] sm:$0xff]  }
  0x94   :  { %945 = vmatpush1.bf16.msra.mxu0 %v1978_v12  ;;  %1031 = vmatpush1.bf16.msra.mxu1 %v1981_v13  ;;  %v2073_v12 = vld [vmem:[#allocation7 + $0x50] sm:$0xff]  }
  0x95   :  { %946 = vmatprep.subr.bf16.mxu0 %v1986_v14  ;;  %1032 = vmatprep.subr.bf16.mxu1 %v1989_v15  ;;  %v2074_v13 = vld [vmem:[#allocation7 + $0xd0] sm:$0xff]  }
  0x96   :  { %v2075_v14 = vld [vmem:[#allocation7 + $0x10] sm:$0xff]  }
  0x97   :  { %v2076_v15 = vld [vmem:[#allocation7 + $0x90] sm:$0xff]  }
  0x98   :  { %947 = vmatpush1.bf16.msra.mxu0 %v1984_v16  ;;  %1033 = vmatpush1.bf16.msra.mxu1 %v1987_v17  ;;  %v2077_v16 = vld [vmem:[#allocation7 + $0x58] sm:$0xff]  }
  0x99   :  { %948 = vmatprep.subr.bf16.mxu0 %v1992_v18  ;;  %1034 = vmatprep.subr.bf16.mxu1 %v1995_v19  ;;  %v2078_v17 = vld [vmem:[#allocation7 + $0xd8] sm:$0xff]  }
  0x9a   :  { %v2079_v18 = vld [vmem:[#allocation7 + $0x18] sm:$0xff]  }
  0x9b   :  { %v2080_v19 = vld [vmem:[#allocation7 + $0x98] sm:$0xff]  }
  0x9c   :  { %949 = vmatpush1.bf16.msra.mxu0 %v1990_v20  ;;  %1035 = vmatpush1.bf16.msra.mxu1 %v1993_v21  ;;  %v2081_v20 = vld [vmem:[#allocation7 + $0x60] sm:$0xff]  }
  0x9d   :  { %950 = vmatprep.subr.bf16.mxu0 %v1998_v22  ;;  %1036 = vmatprep.subr.bf16.mxu1 %v2001_v23  ;;  %v2082_v21 = vld [vmem:[#allocation7 + $0xe0] sm:$0xff]  }
  0x9e   :  { %v2083_v22 = vld [vmem:[#allocation7 + $0x20] sm:$0xff]  }
  0x9f   :  { %v2084_v23 = vld [vmem:[#allocation7 + $0xa0] sm:$0xff]  }
  0xa0   :  { %951 = vmatpush1.bf16.msra.mxu0 %v1996_v24  ;;  %1037 = vmatpush1.bf16.msra.mxu1 %v1999_v25  ;;  %v2085_v24 = vld [vmem:[#allocation7 + $0x68] sm:$0xff]  }
  0xa1   :  { %952 = vmatprep.subr.bf16.mxu0 %v2004_v26  ;;  %1038 = vmatprep.subr.bf16.mxu1 %v2007_v27  ;;  %v2086_v25 = vld [vmem:[#allocation7 + $0xe8] sm:$0xff]  }
  0xa2   :  { %v2087_v26 = vld [vmem:[#allocation7 + $0x28] sm:$0xff]  }
  0xa3   :  { %v2088_v27 = vld [vmem:[#allocation7 + $0xa8] sm:$0xff]  }
  0xa4   :  { %953 = vmatpush1.bf16.msra.mxu0 %v2002_v28  ;;  %1039 = vmatpush1.bf16.msra.mxu1 %v2005_v29  ;;  %v2089_v28 = vld [vmem:[#allocation7 + $0x70] sm:$0xff]  }
  0xa5   :  { %954 = vmatprep.subr.bf16.mxu0 %v2010_v31  ;;  %1040 = vmatprep.subr.bf16.mxu1 %v2013_v32  ;;  %v2090_v29 = vld [vmem:[#allocation7 + $0xf0] sm:$0xff]   ;;  %v2093_v32 = vld [vmem:[#allocation7 + $0x78] sm:$0xff]  }
  0xa6   :  { %v2092_v31 = vld [vmem:[#allocation7 + $0xb0] sm:$0xff]  }
  0xa8   :  { %955 = vmatpush1.bf16.msra.mxu0 %v2008_v33  ;;  %1041 = vmatpush1.bf16.msra.mxu1 %v2011_v34  ;;  %v2094_v33 = vld [vmem:[#allocation7 + $0xf8] sm:$0xff]  }
  0xa9   :  { %956 = vmatprep.subr.bf16.mxu0 %v2016_v35  ;;  %1042 = vmatprep.subr.bf16.mxu1 %v2019_v36  ;;  %v2095_v34 = vld [vmem:[#allocation7 + $0x38] sm:$0xff]   ;;  %v2239_v36 = vmov 0.0  }
  0xaa   :  { %v2096_v35 = vld [vmem:[#allocation7 + $0xb8] sm:$0xff]  }
  0xac   :  { %957 = vmatpush1.bf16.msra.mxu0 %v2014_v37  ;;  %1043 = vmatpush1.bf16.msra.mxu1 %v2017_v38  ;;  %v217_v37 = vlaneseq }
  0xad   :  { %958 = vmatprep.subr.bf16.mxu0 %v2022_v39  ;;  %1044 = vmatprep.subr.bf16.mxu1 %v2025_v40 }
  0xae   :  { %v218_v38 = vshrl.u32 %v217_v37, 7 }
  0xb0   :  { %959 = vmatpush1.bf16.msra.mxu0 %v2020_v41  ;;  %1045 = vmatpush1.bf16.msra.mxu1 %v2023_v42  ;;  %v219_v39 = vsub.s32 0, %v218_v38  ;;  %v227_v40 = vsub.s32 2, %v218_v38  ;;  %v215_v41 = vld [vmem:[%s2378_s2] sm:$0xf]  ;;  %v223_v42 = vsub.s32 1, %v218_v38 }
  0xb1   :  { %960 = vmatprep.subr.bf16.mxu0 %v2028_v43  ;;  %1046 = vmatprep.subr.bf16.mxu1 %v2031_v44  ;;  %v231_v43 = vsub.s32 3, %v218_v38 }
  0xb2   :  { %v220_v44 = vrot.slane %v215_v41, %v219_v39 }
  0xb4   :  { %961 = vmatpush1.bf16.msra.mxu0 %v2026_v45  ;;  %1047 = vmatpush1.bf16.msra.mxu1 %v2029_v46  ;;  %v228_v45 = vrot.slane %v215_v41, %v227_v40  ;;  %v224_v46 = vrot.slane %v215_v41, %v223_v42  ;;  %v1747_v40 = vld [vmem:[%s2382_s6] ss:$0 sm:$0xff]  ;;  %s2201_s6 = scalar_lea.vmem %s1569_s8, 128 }
  0xb5   :  { %962 = vmatprep.subr.bf16.mxu0 %v2034_v47  ;;  %1048 = vmatprep.subr.bf16.mxu1 %v2037_v48  ;;  %v232_v47 = vrot.slane %v215_v41, %v231_v43  ;;  %p2202_p4 = scmp.ne.s32.totalorder %s1569_s8, %s2201_s6  ;;  %p2207_p6 = scmp.lt.s32.totalorder %s2201_s6, %s2201_s6 }
  0xb7   :  { %p2208_p7 = por %p2207_p6, %p2206_p5 }
  0xb8   :  { %963 = vmatpush1.bf16.msra.mxu0 %v2032_v49  ;;  %1049 = vmatpush1.bf16.msra.mxu1 %v2035_v50 }
  0xb9   :  { %964 = vmatprep.subr.bf16.mxu0 %v2040_v51  ;;  %1050 = vmatprep.subr.bf16.mxu1 %v2043_v52  ;;  %p2209_p8 = pnand %p2208_p7, %p2202_p4 }
  0xbc   :  { %965 = vmatpush1.bf16.msra.mxu0 %v2038_v53  ;;  %1051 = vmatpush1.bf16.msra.mxu1 %v2041_v54 }
  0xbd   :  { %966 = vmatprep.subr.bf16.mxu0 %v2046_v55  ;;  %1052 = vmatprep.subr.bf16.mxu1 %v2049_v56 }
  0xc0   :  { %967 = vmatpush1.bf16.msra.mxu0 %v2044_v57  ;;  %1053 = vmatpush1.bf16.msra.mxu1 %v2047_v58 }
  0xc1   :  { %968 = vmatprep.subr.bf16.mxu0 %v2052_v59  ;;  %1054 = vmatprep.subr.bf16.mxu1 %v2055_v60 }
  0xc4   :  { %969 = vmatpush1.bf16.msra.mxu0 %v2050_v61  ;;  %1055 = vmatpush1.bf16.msra.mxu1 %v2053_v62 }
  0xc5   :  { %970 = vmatprep.subr.bf16.mxu0 %v2058_v63  ;;  %1056 = vmatprep.subr.bf16.mxu1 %v2061_v0 }
  0xc8   :  { %971 = vmatpush1.bf16.msra.mxu0 %v2056_v1  ;;  %1057 = vmatpush1.bf16.msra.mxu1 %v2059_v2 }
  0xc9   :  { %1767 = vmatprep.subr.bf16.mxu0 %v2065_v3  ;;  %1789 = vmatprep.subr.bf16.mxu1 %v2066_v4 }
  0xcb   :  { %973 = vmatmul.mubr.bf16.vlgmr.msra.gmra.mrb[0].mxu0 %v2062_v5  ;;  %1059 = vmatmul.mubr.bf16.vlgmr.msra.gmra.mrb[0].mxu1 %v2062_v5 }
  0xcc   :  { %1768 = vmatpush3.bf16.msra.mxu0 %v2067_v6  ;;  %1790 = vmatpush3.bf16.msra.mxu1 %v2068_v7 }
  0xcd   :  { %1769 = vmatprep.subr.bf16.mxu0 %v2069_v8  ;;  %1791 = vmatprep.subr.bf16.mxu1 %v2070_v9 }
  0xd0   :  { %1770 = vmatpush3.bf16.msra.mxu0 %v2071_v10  ;;  %1792 = vmatpush3.bf16.msra.mxu1 %v2072_v11 }
  0xd1   :  { %1771 = vmatprep.subr.bf16.mxu0 %v2073_v12  ;;  %1793 = vmatprep.subr.bf16.mxu1 %v2074_v13  ;;  %v2097_v12 = vld [vmem:[#allocation8] sm:$0xff]   ;;  %v2098_v13 = vld [vmem:[#allocation8 + $0x8] sm:$0xff]  }
  0xd4   :  { %1772 = vmatpush3.bf16.msra.mxu0 %v2075_v14  ;;  %1794 = vmatpush3.bf16.msra.mxu1 %v2076_v15  ;;  %v2099_v14 = vld [vmem:[#allocation8 + $0x10] sm:$0xff]   ;;  %v2100_v15 = vld [vmem:[#allocation8 + $0x18] sm:$0xff]  }
  0xd5   :  { %1773 = vmatprep.subr.bf16.mxu0 %v2077_v16  ;;  %1795 = vmatprep.subr.bf16.mxu1 %v2078_v17  ;;  %v2101_v16 = vld [vmem:[#allocation8 + $0x20] sm:$0xff]   ;;  %v2102_v17 = vld [vmem:[#allocation8 + $0x28] sm:$0xff]  }
  0xd8   :  { %1774 = vmatpush3.bf16.msra.mxu0 %v2079_v18  ;;  %1796 = vmatpush3.bf16.msra.mxu1 %v2080_v19  ;;  %v2103_v18 = vld [vmem:[#allocation8 + $0x30] sm:$0xff]   ;;  %v2104_v19 = vld [vmem:[#allocation8 + $0x38] sm:$0xff]  }
  0xd9   :  { %1775 = vmatprep.subr.bf16.mxu0 %v2081_v20  ;;  %1797 = vmatprep.subr.bf16.mxu1 %v2082_v21 }
  0xdc   :  { %1776 = vmatpush3.bf16.msra.mxu0 %v2083_v22  ;;  %1798 = vmatpush3.bf16.msra.mxu1 %v2084_v23  ;;  %v1714_v22 = vld [vmem:[%s2380_s4] ss:$0 sm:$0xff] }
  0xdd   :  { %1777 = vmatprep.subr.bf16.mxu0 %v2085_v24  ;;  %1799 = vmatprep.subr.bf16.mxu1 %v2086_v25 }
  0xe0   :  { %1778 = vmatpush3.bf16.msra.mxu0 %v2087_v26  ;;  %1800 = vmatpush3.bf16.msra.mxu1 %v2088_v27 }
  0xe1   :  { %1779 = vmatprep.subr.bf16.mxu0 %v2089_v28  ;;  %1801 = vmatprep.subr.bf16.mxu1 %v2090_v29 }
  0xe4   :  { %1780 = vmatpush3.bf16.msra.mxu0 %v2091_v30  ;;  %1802 = vmatpush3.bf16.msra.mxu1 %v2092_v31 }
  0xe5   :  { %1781 = vmatprep.subr.bf16.mxu0 %v2093_v32  ;;  %1803 = vmatprep.subr.bf16.mxu1 %v2094_v33 }
  0xe8   :  { %1782 = vmatpush3.bf16.msra.mxu0 %v2095_v34  ;;  %1804 = vmatpush3.bf16.msra.mxu1 %v2096_v35 }
  0xe9   :  { %1820 = vmatprep.subr.bf16.mxu0 %v2239_v36 }
 0x19e   :  { %v974_v48 = vpop.f32.mrb[0].mxu0  ;;  %v1060_v49 = vpop.f32.mrb[0].mxu1 }
 0x19f   :  { %v1840_v50 = vadd.f32 %v974_v48, %v220_v44  ;;  %v1844_v51 = vadd.f32 %v1060_v49, %v228_v45  ;;  %v976_v52 = vpop.f32.mrb[1].mxu0  ;;  %v1062_v53 = vpop.f32.mrb[1].mxu1 }
 0x1a0   :  { %v1841_v54 = vadd.f32 %v976_v52, %v224_v46  ;;  %v1845_v55 = vadd.f32 %v1062_v53, %v232_v47  ;;  %v978_v56 = vpop.f32.mrb[2].mxu0  ;;  %v1064_v57 = vpop.f32.mrb[2].mxu1 }
 0x1a1   :  { %v1842_v58 = vadd.f32 %v978_v56, %v220_v44  ;;  %v1846_v59 = vadd.f32 %v1064_v57, %v228_v45  ;;  %v980_v60 = vpop.f32.mrb[3].mxu0  ;;  %v1066_v61 = vpop.f32.mrb[3].mxu1  ;;  %v1069_v0 = vmax.f32 %v1840_v50, 0.0  ;;  %v1071_v1 = vmax.f32 %v1844_v51, 0.0 }
 0x1a2   :  { %v1843_v62 = vadd.f32 %v980_v60, %v224_v46  ;;  %v1847_v63 = vadd.f32 %v1066_v61, %v232_v47  ;;  %v1070_v4 = vmax.f32 %v1841_v54, 0.0  ;;  %v1072_v5 = vmax.f32 %v1845_v55, 0.0 }
 0x1a3   :  { %v1073_v2 = vmax.f32 %v1842_v58, 0.0  ;;  %v1075_v3 = vmax.f32 %v1846_v59, 0.0 }
 0x1a4   :  { %v1074_v6 = vmax.f32 %v1843_v62, 0.0  ;;  %v1076_v7 = vmax.f32 %v1847_v63, 0.0 }
 0x1a5   :  { %v1077_v8 = vpack.c.bf16 %v1073_v2, %v1069_v0  ;;  %v1079_v9 = vpack.c.bf16 %v1075_v3, %v1071_v1 }
 0x1a6   :  { %v1078_v10 = vpack.c.bf16 %v1074_v6, %v1070_v4  ;;  %v1080_v11 = vpack.c.bf16 %v1076_v7, %v1072_v5 }
 0x1a8   :  { %1376 = vmatprep.mubr.bf16.mxu0 %v1078_v10  ;;  %1417 = vmatprep.mubr.bf16.mxu1 %v1080_v11 }
 0x1a9   :  { %1377 = vmatmul.mubr.bf16.vlgmr.msra.gmra.mrb[4].mxu0 %v1077_v8  ;;  %1418 = vmatmul.mubr.bf16.vlgmr.msra.gmra.mrb[4].mxu1 %v1079_v9 }
 0x1aa   :  { %1821 = vmatpush3.bf16.msra.mxu0 %v2097_v12  ;;  %1836 = vmatprep.mubr.msk.bf16.mxu0 %vm2240_vm0, %v2239_v36 }
 0x1ab   :  { %1822 = vmatprep.subr.bf16.mxu0 %v2239_v36 }
 0x1ae   :  { %1823 = vmatpush3.bf16.msra.mxu0 %v2098_v13 }
 0x1af   :  { %1824 = vmatprep.subr.bf16.mxu0 %v2239_v36 }
 0x1b2   :  { %1825 = vmatpush3.bf16.msra.mxu0 %v2099_v14 }
 0x1b3   :  { %1826 = vmatprep.subr.bf16.mxu0 %v2239_v36 }
 0x1b6   :  { %1827 = vmatpush3.bf16.msra.mxu0 %v2100_v15 }
 0x1b7   :  { %1828 = vmatprep.subr.bf16.mxu0 %v2239_v36 }
 0x1ba   :  { %1829 = vmatpush3.bf16.msra.mxu0 %v2101_v16 }
 0x1bb   :  { %1830 = vmatprep.subr.bf16.mxu0 %v2239_v36 }
 0x1be   :  { %1831 = vmatpush3.bf16.msra.mxu0 %v2102_v17 }
 0x1bf   :  { %1832 = vmatprep.subr.bf16.mxu0 %v2239_v36 }
 0x1c2   :  { %1833 = vmatpush3.bf16.msra.mxu0 %v2103_v18 }
 0x1c3   :  { %1834 = vmatprep.subr.bf16.mxu0 %v2239_v36 }
 0x1c6   :  { %1835 = vmatpush3.bf16.msra.mxu0 %v2104_v19 }
 0x27c   :  { %v1783_v20 = vpop.f32.mrb[4].mxu0  ;;  %v1805_v21 = vpop.f32.mrb[4].mxu1 }
 0x27d   :  { %v1784_v23 = vpop.f32.mrb[5].mxu0  ;;  %v1806_v24 = vpop.f32.mrb[5].mxu1 }
 0x27e   :  { %v1785_v25 = vadd.f32 %v1784_v23, %v1783_v20  ;;  %v1807_v26 = vadd.f32 %v1806_v24, %v1805_v21  ;;  %v1786_v27 = vpop.f32.mrb[6].mxu0  ;;  %v1808_v28 = vpop.f32.mrb[6].mxu1 }
 0x27f   :  { %v1787_v29 = vpop.f32.mrb[7].mxu0  ;;  %v1809_v30 = vpop.f32.mrb[7].mxu1 }
 0x280   :  { %v1379_v31 = vadd.f32 %v1785_v25, %v1714_v22  ;;  %v1788_v32 = vadd.f32 %v1787_v29, %v1786_v27  ;;  %v1810_v33 = vadd.f32 %v1809_v30, %v1808_v28 }
 0x282   :  { %v1420_v34 = vadd.f32 %v1807_v26, %v1379_v31  ;;  %v1382_v35 = vadd.f32 %v1788_v32, %v1714_v22 }
 0x284   :  { %v1423_v36 = vadd.f32 %v1810_v33, %v1382_v35  ;;  %v1426_v37 = vmax.f32 %v1420_v34, 0.0 }
 0x286   :  { %v1427_v38 = vmax.f32 %v1423_v36, 0.0 }
 0x288   :  { %v1428_v39 = vpack.c.bf16 %v1427_v38, %v1426_v37 }
 0x28a   :  { %1837 = vmatmul.mubr.bf16.vlgmr.msra.gmra.mrb[8].mxu0 %v1428_v39 }
 0x35d   :  { %v1534_v41 = vpop.f32.mrb[8].mxu0 }
 0x35e   :  { %v1535_v42 = vadd.f32 %v1747_v40, %v1534_v41  ;;  %v1838_v43 = vpop.f32.mrb[9].mxu0 }
 0x35f   :  { %v1537_v44 = vpop.f32.mrb[10].mxu0 }
 0x360   :  { %v1756_v45 = vmul.f32 -1.442695, %v1535_v42  ;;  %v1538_v46 = vadd.f32 %v1747_v40, %v1537_v44  ;;  %v1839_v47 = vpop.f32.mrb[11].mxu0 }
 0x362   :  { %2105 = vpow2.f32 %v1756_v45  ;;  %v1757_v48 = vmul.f32 -1.442695, %v1538_v46 }
 0x364   :  { %2107 = vpow2.f32 %v1757_v48 }
 0x36c   :  { %v2106_v49 = vpop.eup %2105 }
 0x36d   :  { %v1547_v50 = vadd.f32 1.0, %v2106_v49 }
 0x36e   :  { %v2108_v51 = vpop.eup %2107 }
 0x36f   :  { %v1548_v52 = vadd.f32 1.0, %v2108_v51  ;;  %2109 = vrcp.f32 %v1547_v50 }
 0x371   :  { %2111 = vrcp.f32 %v1548_v52 }
 0x379   :  { %v2110_v53 = vpop.eup %2109 }
 0x37b   :  { %v2112_v54 = vpop.eup %2111 }
 0x37c   :  { %v1765_v55 = vpack.c.bf16 %v2112_v54, %v2110_v53 }
 0x37e   :  { %1766 = vst [vmem:[#allocation10] sm:$0xff] %v1765_v55  }
 0x37f   :  { %2212 = shalt.err (!%p2209_p8)
}
 0x380   :  { %s2213_s11 = scalar_lea.hbm %s2383_s7, 128 }
 0x381   :  { %p2214_p9 = scmp.ne.s32.totalorder %s2383_s7, %s2213_s11  ;;  %p2217_p10 = scmp.lt.u32.totalorder %s2213_s11, %s2383_s7 }
 0x383   :  { %p2219_p11 = pnand %p2217_p10, %p2214_p9 }
 0x385   :  { %2222 = shalt.err (!%p2219_p11)
}
 0x386   :  { %1574 = dma.vmem_to_hbm [thread:$0]  %s1569_s8, 128, %s2383_s7, [#allocation4], %s2236_s0, %s2236_s0, %s2237_s27  }
 0x387   :  { %2229 = dma.done.wait [#allocation4], 128  }
 0x388   :  { %2230 = vsyncadd [#allocation4], 4294967168 }
 0x389   :  { %1578 = vsyncpa [#allocation3], 1 }
 0x38a   :  { %1579 = vsyncpa [#allocation6], 1 }
 0x38b   :  { %1580 = vsyncpa [#allocation9], 1 }
 0x38c   :  { %1581 = vsyncpa [#allocation4], 1 }

</bundles_post_ra>
